<compile_context>
chip_gen: v7x
topology: tpu7x:2x2x1
jax: 0.10.0
libtpu: 0.0.40
codegen_flags: <defaults>
</compile_context>

<pallas_src>
import functools

import jax
import jax.numpy as jnp
from jax.experimental import pallas as pl
from jax.experimental.pallas import tpu as pltpu

LANES = 128          # lane width (fixed by hardware)
MAX_TILE_ROWS = 2048 # ~1 MiB / f32 buffer; 2 inputs x 2 pipeline bufs = 4 MiB VMEM
NUM_SPLITS = 2       # leading "parallel" axis so v7x can use both TensorCores


def _round_up(x, m):
    return ((x + m - 1) // m) * m


def _dice_partial_kernel(p_ref, t_ref, out_ref, acc_pt, acc_ps, *,
                         blocks_per_split, tile_rows, valid_rows, need_mask):
    """Accumulates partial (sum(p*t), sum(p)+sum(t)) for one split of the data."""
    j = pl.program_id(1)

    @pl.when(j == 0)
    def _():
        acc_pt[...] = jnp.zeros_like(acc_pt)
        acc_ps[...] = jnp.zeros_like(acc_ps)

    p = p_ref[...].astype(jnp.float32)
    t = t_ref[...].astype(jnp.float32)

    if need_mask:
        # Mask rows past the real data (covers both the ragged last tile and
        # fully out-of-bounds padding blocks of the split decomposition).
        i = pl.program_id(0)
        g = i * blocks_per_split + j                      # global block index
        row = jax.lax.broadcasted_iota(jnp.int32, (tile_rows, LANES), 0)
        mask = (g * tile_rows + row) < valid_rows
        p = jnp.where(mask, p, 0.0)
        t = jnp.where(mask, t, 0.0)

    # Pure elementwise accumulation (VPU), hidden under the input DMAs.
    acc_pt[...] += p * t
    acc_ps[...] += p + t

    @pl.when(j == pl.num_programs(1) - 1)
    def _():
        # One cross-lane reduction per split, in the epilogue only.
        out_ref[0, 0] = jnp.sum(acc_pt[...])   # partial intersection
        out_ref[0, 1] = jnp.sum(acc_ps[...])   # partial sum(p) + sum(t)


def dice_loss(pred, target, smooth=1.0):
    """Pallas TPU implementation of DiceLoss.forward (returns a scalar)."""
    assert pred.shape == target.shape, "pred/target shapes must match"

    p_flat = pred.reshape(-1)
    t_flat = target.reshape(-1)
    n = p_flat.shape[0]

    # Only pad when the element count is not lane-divisible (rare for NN
    # tensors); zero padding is sum-neutral so the result is unchanged.
    rem = n % LANES
    if rem:
        pad = LANES - rem
        p_flat = jnp.pad(p_flat, (0, pad))
        t_flat = jnp.pad(t_flat, (0, pad))

    rows = p_flat.shape[0] // LANES
    p2d = p_flat.reshape(rows, LANES)   # free reshape (no HBM copy)
    t2d = t_flat.reshape(rows, LANES)

    tile_rows = min(MAX_TILE_ROWS, _round_up(rows, 8))
    total_blocks = pl.cdiv(rows, tile_rows)
    num_splits = min(NUM_SPLITS, total_blocks)
    blocks_per_split = pl.cdiv(total_blocks, num_splits)
    covered_rows = num_splits * blocks_per_split * tile_rows
    need_mask = covered_rows != rows    # static: mask code only emitted if needed

    kernel = functools.partial(
        _dice_partial_kernel,
        blocks_per_split=blocks_per_split,
        tile_rows=tile_rows,
        valid_rows=rows,
        need_mask=need_mask,
    )

    in_bytes = p2d.size * p2d.dtype.itemsize + t2d.size * t2d.dtype.itemsize
    cost = pl.CostEstimate(
        flops=5 * n,
        transcendentals=0,
        bytes_accessed=in_bytes + num_splits * 2 * 4,
    )

    partials = pl.pallas_call(
        kernel,
        out_shape=jax.ShapeDtypeStruct((num_splits, 2), jnp.float32),
        grid_spec=pltpu.PrefetchScalarGridSpec(
            num_scalar_prefetch=0,
            grid=(num_splits, blocks_per_split),
            in_specs=[
                pl.BlockSpec((tile_rows, LANES),
                             lambda i, j: (i * blocks_per_split + j, 0)),
                pl.BlockSpec((tile_rows, LANES),
                             lambda i, j: (i * blocks_per_split + j, 0)),
            ],
            out_specs=pl.BlockSpec((1, 2), lambda i, j: (i, 0),
                                   memory_space=pltpu.SMEM),
            scratch_shapes=[
                pltpu.VMEM((tile_rows, LANES), jnp.float32),  # sum(p*t) slab
                pltpu.VMEM((tile_rows, LANES), jnp.float32),  # sum(p+t) slab
            ],
        ),
        compiler_params=pltpu.CompilerParams(
            dimension_semantics=("parallel", "arbitrary"),
        ),
        cost_estimate=cost,
    )(p2d, t2d)

    # Combine per-split partial sums (tiny scalar math) outside the kernel.
    smooth = jnp.float32(smooth)
    intersection = jnp.sum(partials[:, 0])
    denom_sum = jnp.sum(partials[:, 1])
    dice = (2.0 * intersection + smooth) / (denom_sum + smooth)
    return 1.0 - dice


def dice_loss_ref(pred, target, smooth=1.0):
    """Pure-JAX reference matching the PyTorch module."""
    p = pred.reshape(-1).astype(jnp.float32)
    t = target.reshape(-1).astype(jnp.float32)
    intersection = jnp.sum(p * t)
    dice = (2.0 * intersection + smooth) / (jnp.sum(p) + jnp.sum(t) + smooth)
    return 1.0 - dice


if __name__ == "__main__":
    key = jax.random.PRNGKey(0)
    k1, k2 = jax.random.split(key)

    # Small segmentation-style shapes: (B, C, H, W) = (2, 4, 16, 16)
    pred = jax.nn.sigmoid(jax.random.normal(k1, (2, 4, 16, 16), dtype=jnp.float32))
    target = (jax.random.uniform(k2, (2, 4, 16, 16)) > 0.5).astype(jnp.float32)

    loss = dice_loss(pred, target, smooth=1.0)
    loss = jax.block_until_ready(loss)

    ref = dice_loss_ref(pred, target, smooth=1.0)
    assert jnp.allclose(loss, ref, rtol=1e-5, atol=1e-6), (loss, ref)

    print("KERNEL_OK")
</pallas_src>

<mosaic_0001>
module attributes {stable_mosaic.version = 11 : i64} {
  func.func @_dice_partial_kernel(%arg0: i32, %arg1: i32, %arg2: memref<16x128xf32, #tpu.memory_space<vmem>>, %arg3: memref<16x128xf32, #tpu.memory_space<vmem>>, %arg4: memref<1x2xf32, #tpu.memory_space<smem>>, %arg5: memref<16x128xf32, #tpu.memory_space<vmem>>, %arg6: memref<16x128xf32, #tpu.memory_space<vmem>>) attributes {dimension_semantics = [#tpu.dimension_semantics<parallel>, #tpu.dimension_semantics<arbitrary>], iteration_bounds = array<i64: 1, 1>, scalar_prefetch = 0 : i64, scratch_operands = 2 : i64, tpu.core_type = #tpu.core_type<tc>, window_params = [{transform_indices = @transform_0, window_bounds = array<i64: 16, 128>}, {transform_indices = @transform_1, window_bounds = array<i64: 16, 128>}, {transform_indices = @transform_2, window_bounds = array<i64: 1, 2>}]} {
    %c0_i32 = arith.constant 0 : i32
    %0 = arith.cmpi eq, %arg1, %c0_i32 : i32
    %1 = arith.extui %0 : i1 to i32
    %c0_i32_0 = arith.constant 0 : i32
    %2 = arith.cmpi ne, %1, %c0_i32_0 : i32
    scf.if %2 {
      %cst = arith.constant 0.000000e+00 : f32
      %16 = vector.broadcast %cst : f32 to vector<16x128xf32>
      %c0_14 = arith.constant 0 : index
      %c0_15 = arith.constant 0 : index
      %17 = vector.load %arg5[%c0_14, %c0_15] : memref<16x128xf32, #tpu.memory_space<vmem>>, vector<16x128xf32>
      tpu.vector_store %arg5[%c0_14, %c0_15], %16 {strides = array<i32>} : memref<16x128xf32, #tpu.memory_space<vmem>>, vector<16x128xf32>,
      %cst_16 = arith.constant 0.000000e+00 : f32
      %18 = vector.broadcast %cst_16 : f32 to vector<16x128xf32>
      %c0_17 = arith.constant 0 : index
      %c0_18 = arith.constant 0 : index
      %19 = vector.load %arg6[%c0_17, %c0_18] : memref<16x128xf32, #tpu.memory_space<vmem>>, vector<16x128xf32>
      tpu.vector_store %arg6[%c0_17, %c0_18], %18 {strides = array<i32>} : memref<16x128xf32, #tpu.memory_space<vmem>>, vector<16x128xf32>,
    } else {
    }
    %c0 = arith.constant 0 : index
    %c0_1 = arith.constant 0 : index
    %3 = vector.load %arg2[%c0, %c0_1] : memref<16x128xf32, #tpu.memory_space<vmem>>, vector<16x128xf32>
    %c0_2 = arith.constant 0 : index
    %c0_3 = arith.constant 0 : index
    %4 = vector.load %arg3[%c0_2, %c0_3] : memref<16x128xf32, #tpu.memory_space<vmem>>, vector<16x128xf32>
    %c0_4 = arith.constant 0 : index
    %c0_5 = arith.constant 0 : index
    %5 = vector.load %arg5[%c0_4, %c0_5] : memref<16x128xf32, #tpu.memory_space<vmem>>, vector<16x128xf32>
    %6 = arith.mulf %3, %4 : vector<16x128xf32>
    %7 = arith.addf %5, %6 : vector<16x128xf32>
    %c0_6 = arith.constant 0 : index
    %c0_7 = arith.constant 0 : index
    %8 = vector.load %arg5[%c0_6, %c0_7] : memref<16x128xf32, #tpu.memory_space<vmem>>, vector<16x128xf32>
    tpu.vector_store %arg5[%c0_6, %c0_7], %7 {strides = array<i32>} : memref<16x128xf32, #tpu.memory_space<vmem>>, vector<16x128xf32>,
    %c0_8 = arith.constant 0 : index
    %c0_9 = arith.constant 0 : index
    %9 = vector.load %arg6[%c0_8, %c0_9] : memref<16x128xf32, #tpu.memory_space<vmem>>, vector<16x128xf32>
    %10 = arith.addf %3, %4 : vector<16x128xf32>
    %11 = arith.addf %9, %10 : vector<16x128xf32>
    %c0_10 = arith.constant 0 : index
    %c0_11 = arith.constant 0 : index
    %12 = vector.load %arg6[%c0_10, %c0_11] : memref<16x128xf32, #tpu.memory_space<vmem>>, vector<16x128xf32>
    tpu.vector_store %arg6[%c0_10, %c0_11], %11 {strides = array<i32>} : memref<16x128xf32, #tpu.memory_space<vmem>>, vector<16x128xf32>,
    %c0_i32_12 = arith.constant 0 : i32
    %13 = arith.cmpi eq, %arg1, %c0_i32_12 : i32
    %14 = arith.extui %13 : i1 to i32
    %c0_i32_13 = arith.constant 0 : i32
    %15 = arith.cmpi ne, %14, %c0_i32_13 : i32
    scf.if %15 {
      %c0_14 = arith.constant 0 : index
      %c0_15 = arith.constant 0 : index
      %16 = vector.load %arg5[%c0_14, %c0_15] : memref<16x128xf32, #tpu.memory_space<vmem>>, vector<16x128xf32>
      %17 = vector.shape_cast %16 : vector<16x128xf32> to vector<1x16x128xf32>
      %cst = arith.constant dense<0.000000e+00> : vector<1xf32>
      %18 = vector.multi_reduction <add>, %17, %cst [1, 2] : vector<1x16x128xf32> to vector<1xf32>
      %19 = vector.shape_cast %18 : vector<1xf32> to vector<1x1x1xf32>
      %20 = vector.extract %19[0, 0, 0] : f32 from vector<1x1x1xf32>
      %c0_16 = arith.constant 0 : index
      %c0_17 = arith.constant 0 : index
      %21 = memref.load %arg4[%c0_16, %c0_17] : memref<1x2xf32, #tpu.memory_space<smem>>
      memref.store %20, %arg4[%c0_16, %c0_17] : memref<1x2xf32, #tpu.memory_space<smem>>
      %c0_18 = arith.constant 0 : index
      %c0_19 = arith.constant 0 : index
      %22 = vector.load %arg6[%c0_18, %c0_19] : memref<16x128xf32, #tpu.memory_space<vmem>>, vector<16x128xf32>
      %23 = vector.shape_cast %22 : vector<16x128xf32> to vector<1x16x128xf32>
      %cst_20 = arith.constant dense<0.000000e+00> : vector<1xf32>
      %24 = vector.multi_reduction <add>, %23, %cst_20 [1, 2] : vector<1x16x128xf32> to vector<1xf32>
      %25 = vector.shape_cast %24 : vector<1xf32> to vector<1x1x1xf32>
      %26 = vector.extract %25[0, 0, 0] : f32 from vector<1x1x1xf32>
      %c0_21 = arith.constant 0 : index
      %c1 = arith.constant 1 : index
      %27 = memref.load %arg4[%c0_21, %c1] : memref<1x2xf32, #tpu.memory_space<smem>>
      memref.store %26, %arg4[%c0_21, %c1] : memref<1x2xf32, #tpu.memory_space<smem>>
    } else {
    }
    return
  }
  func.func @transform_0(%arg0: i32, %arg1: i32) -> (i32, i32) {
    %c1_i32 = arith.constant 1 : i32
    %0 = arith.muli %arg0, %c1_i32 : i32
    %1 = arith.addi %0, %arg1 : i32
    %c0_i32 = arith.constant 0 : i32
    %c0_i32_0 = arith.constant 0 : i32
    return %1, %c0_i32 : i32, i32
  }
  func.func @transform_1(%arg0: i32, %arg1: i32) -> (i32, i32) {
    %c1_i32 = arith.constant 1 : i32
    %0 = arith.muli %arg0, %c1_i32 : i32
    %1 = arith.addi %0, %arg1 : i32
    %c0_i32 = arith.constant 0 : i32
    %c0_i32_0 = arith.constant 0 : i32
    return %1, %c0_i32 : i32, i32
  }
  func.func @transform_2(%arg0: i32, %arg1: i32) -> (i32, i32) {
    %c0_i32 = arith.constant 0 : i32
    %c0_i32_0 = arith.constant 0 : i32
    return %arg0, %c0_i32 : i32, i32
  }
}

</mosaic_0001>

<bundles_post_ra>
// kernel: tpu_custom_call.1
= control target key start
LH: loop header
LB: loop body
LE: loop exit
PB: predicated region body
PF: predicated region fallthrough
CT: control target
= control target key end

     0   :  { %7 = vsyncpa [#allocation5], 0  ;;  %s251_s0 = inlined_call_operand.hbm [shape: f32[16,128], index: 0, kind: input, shape index: {}]   ;;  %s252_s1 = inlined_call_operand.hbm [shape: f32[16,128], index: 1, kind: input, shape index: {}]   ;;  %s253_s2 = inlined_call_operand.hbm [shape: f32[1,2], index: 2, kind: output, shape index: {}]  }
   0x1   :  { %8 = vsyncpa [#allocation8], 0 }
   0x2   :  { %9 = vsyncpa [#allocation6], 0  ;;  %s195_s9 = smov [#allocation4]   ;;  %s135_s13 = scalar_lea.hbm %s251_s0, 256 }
   0x3   :  { %s19_s10 = sshll.u32 %s195_s9, 4  ;;  %p136_p0 = scmp.ne.s32.totalorder %s251_s0, %s135_s13  ;;  %s20_s10 = int_to_ptr.vmem [resolvable:$true] %s19_s10 }
   0x4   :  { %p139_p1 = scmp.lt.u32.totalorder %s135_s13, %s251_s0 }
   0x6   :  { %p141_p2 = pnand %p139_p1, %p136_p0 }
   0x8   :  { %144 = shalt.err (!%p141_p2)
}
   0x9   :  { %s145_s18 = scalar_lea.vmem %s20_s10, 256  ;;  %p150_p4 = scmp.lt.s32.totalorder %s20_s10, %s20_s10 }
   0xa   :  { %p146_p3 = scmp.ne.s32.totalorder %s20_s10, %s145_s18  ;;  %p151_p5 = scmp.lt.s32.totalorder %s145_s18, %s145_s18 }
   0xc   :  { %p152_p6 = por %p151_p5, %p150_p4 }
   0xe   :  { %p153_p7 = pnand %p152_p6, %p146_p3 }
  0x10   :  { %156 = shalt.err (!%p153_p7)
}
  0x11   :  { %s196_s19 = smov 128   ;;  %s197_s20 = smov 8  }
  0x12   :  { %25 = dma.hbm_to_vmem [thread:$0]  %s251_s0, 256, %s20_s10, [#allocation5], %s196_s19, %s196_s19, %s197_s20  }
  0x13   :  { %s198_s23 = smov [#allocation7]   ;;  %s157_s27 = scalar_lea.hbm %s252_s1, 256 }
  0x14   :  { %s35_s24 = sshll.u32 %s198_s23, 4  ;;  %p158_p8 = scmp.ne.s32.totalorder %s252_s1, %s157_s27  ;;  %s36_s24 = int_to_ptr.vmem [resolvable:$true] %s35_s24 }
  0x15   :  { %p161_p9 = scmp.lt.u32.totalorder %s157_s27, %s252_s1 }
  0x17   :  { %p163_p10 = pnand %p161_p9, %p158_p8 }
  0x19   :  { %166 = shalt.err (!%p163_p10)
}
  0x1a   :  { %s167_s4 = scalar_lea.vmem %s36_s24, 256  ;;  %p172_p12 = scmp.lt.s32.totalorder %s36_s24, %s36_s24 }
  0x1b   :  { %p168_p11 = scmp.ne.s32.totalorder %s36_s24, %s167_s4  ;;  %p173_p13 = scmp.lt.s32.totalorder %s167_s4, %s167_s4 }
  0x1d   :  { %p174_p0 = por %p173_p13, %p172_p12 }
  0x1f   :  { %p175_p1 = pnand %p174_p0, %p168_p11 }
  0x21   :  { %178 = shalt.err (!%p175_p1)
}
  0x22   :  { %41 = dma.hbm_to_vmem [thread:$0]  %s252_s1, 256, %s36_s24, [#allocation8], %s196_s19, %s196_s19, %s197_s20  }
  0x23   :  { %189 = dma.done.wait [#allocation5], 256  }
  0x24   :  { %190 = vsyncadd [#allocation5], 4294967040 }
  0x25   :  { %191 = dma.done.wait [#allocation8], 256  }
  0x26   :  { %192 = vsyncadd [#allocation8], 4294967040  ;;  %v60_v0 = vld [vmem:[#allocation4] sm:$0xff]  ;;  %v61_v1 = vld [vmem:[#allocation4 + $0x8] sm:$0xff]  ;;  %s179_s9 = scalar_lea.hbm %s253_s2, 16 }
  0x27   :  { %v62_v2 = vld [vmem:[#allocation7] sm:$0xff]  ;;  %v63_v3 = vld [vmem:[#allocation7 + $0x8] sm:$0xff]  ;;  %p180_p2 = scmp.ne.s32.totalorder %s253_s2, %s179_s9  ;;  %p183_p3 = scmp.lt.u32.totalorder %s179_s9, %s253_s2 }
  0x28   :  { %v66_v4 = vmul.f32 %v62_v2, %v60_v0  ;;  %v67_v5 = vmul.f32 %v63_v3, %v61_v1  ;;  %v74_v6 = vadd.f32 %v62_v2, %v60_v0  ;;  %v75_v7 = vadd.f32 %v63_v3, %v61_v1 }
  0x29   :  { %p185_p4 = pnand %p183_p3, %p180_p2 }
  0x2a   :  { %v85_v8 = vadd.f32 %v67_v5, %v66_v4  ;;  %v99_v9 = vadd.f32 %v75_v7, %v74_v6 }
  0x2c   :  { %86 = vadd.xlane.f32.xlu0 %v85_v8 }
  0x30   :  { %100 = vadd.xlane.f32.xlu0 %v99_v9 }
  0xb9   :  { %v87_v10 = vpop.xlane.xlu0 %86 }
  0xba   :  { %v88_v11 = vrot.slane %v87_v10, 4 }
  0xbc   :  { %v89_v12 = vadd.f32 %v88_v11, %v87_v10 }
  0xbd   :  { %v101_v13 = vpop.xlane.xlu0 %100 }
  0xbe   :  { %v90_v14 = vrot.slane %v89_v12, 2  ;;  %v102_v15 = vrot.slane %v101_v13, 4 }
  0xc0   :  { %v103_v16 = vadd.f32 %v102_v15, %v101_v13  ;;  %v91_v17 = vadd.f32 %v90_v14, %v89_v12 }
  0xc2   :  { %v104_v18 = vrot.slane %v103_v16, 2  ;;  %v92_v19 = vrot.slane %v91_v17, 1 }
  0xc4   :  { %v105_v20 = vadd.f32 %v104_v18, %v103_v16  ;;  %v93_v21 = vadd.f32 %v92_v19, %v91_v17 }
  0xc6   :  { %126 = vpush %v93_v21  ;;  %v106_v22 = vrot.slane %v105_v20, 1 }
  0xc8   :  { %v107_v23 = vadd.f32 %v106_v22, %v105_v20 }
  0xca   :  { %128 = vpush %v107_v23 }
  0xf7   :  { %s127_s1 = spop %126 }
  0xf8   :  { %96 = sst [smem:[#allocation9]] %s127_s1 }
  0xfb   :  { %s129_s6 = spop %128 }
  0xfc   :  { %110 = sst [smem:[#allocation9 + $0x1]] %s129_s6 }
  0xfd   :  { %188 = shalt.err (!%p185_p4)
}
  0xfe   :  { %s199_s14 = smov [#allocation9]  }
  0xff   :  { %118 = dma.smem_to_hbm %s199_s14, 16, %s253_s2, [#allocation6]  }
 0x100   :  { %193 = dma.done.wait [#allocation6], 16  }
 0x101   :  { %194 = vsyncadd [#allocation6], 4294967280 }
 0x102   :  { %122 = sfence }
 0x103   :  { %123 = vsyncpa [#allocation5], 1 }
 0x104   :  { %124 = vsyncpa [#allocation8], 1 }
 0x105   :  { %125 = vsyncpa [#allocation6], 1 }

</bundles_post_ra>
